<compile_context>
chip_gen: v7x
topology: tpu7x:2x2x1
jax: 0.10.0
libtpu: 0.0.40
codegen_flags: <defaults>
</compile_context>

<pallas_src>
import math

import jax
import jax.numpy as jnp
import numpy as np
from jax.experimental import pallas as pl
from jax.experimental.pallas import tpu as pltpu

# ---------------- configuration (small, consistent with the module) ----------
B = 2          # batch
S = 8          # sequence length
H = 4          # number of heads
DIM = 32       # dim_model
DK = DIM // H  # per-head dim
BS = B * S     # flattened batch*sequence rows
MISC_ROWS = 8 + BS  # 8-row (tile-aligned) bias block + BS mask rows


def mha_kernel(q_ref, k_ref, v_ref, w_ref, misc_ref, o_ref):
    # q_ref/k_ref/v_ref: (BS, DIM) f32 activations (batch flattened into rows)
    # w_ref:    (4*DIM, DIM) bf16 = [Wq^T*scale; Wk^T; Wv^T; Wo^T] (row-stacked,
    #           every slice starts on a bf16 sublane-tile boundary)
    # misc_ref: (8+BS, DIM) f32; rows 0..3 = [bq*scale; bk; bv; bo],
    #           rows 8..8+BS-1, lanes 0..BS-1 = block-diagonal additive mask
    # o_ref:    (BS, DIM) f32
    f32 = jnp.float32
    bf16 = jnp.bfloat16

    wq = w_ref[0 * DIM:1 * DIM, :]          # (DIM, DIM) bf16, 1/sqrt(dk) folded
    wk = w_ref[1 * DIM:2 * DIM, :]
    wv = w_ref[2 * DIM:3 * DIM, :]
    wo = w_ref[3 * DIM:4 * DIM, :]

    bias_blk = misc_ref[0:8, :]             # one aligned tile load
    bq = bias_blk[0:1, :]
    bk = bias_blk[1:2, :]
    bv = bias_blk[2:3, :]
    bo = bias_blk[3:4, :]
    mask_bias = misc_ref[8:8 + BS, 0:BS]    # (BS, BS) f32, precomputed on host

    # --- Q/K/V projections: bf16 MXU operands, f32 accumulation --------------
    qp = jnp.dot(q_ref[...].astype(bf16), wq, preferred_element_type=f32) + bq
    kp = jnp.dot(k_ref[...].astype(bf16), wk, preferred_element_type=f32) + bk
    vp = jnp.dot(v_ref[...].astype(bf16), wv, preferred_element_type=f32) + bv

    # Single transpose -> K contraction-major, heads on sublanes (8-aligned
    # sublane slices per head, no per-head transpose in the score matmul).
    kpT = kp.T                              # (DIM, BS) f32

    ctx_parts = []
    for h in range(H):                      # static, fully unrolled (H = 4)
        sl = slice(h * DK, (h + 1) * DK)
        qh = qp[:, sl].astype(bf16)         # (BS, DK)
        khT = kpT[sl, :].astype(bf16)       # (DK, BS)  contraction-major
        vh = vp[:, sl].astype(bf16)         # (BS, DK)

        # scores already carry 1/sqrt(dk) (folded into Wq/bq); mask/softmax f32
        scores = jnp.dot(qh, khT, preferred_element_type=f32) + mask_bias
        m = jnp.max(scores, axis=-1, keepdims=True)
        e = jnp.exp(scores - m)
        inv_l = pl.reciprocal(jnp.sum(e, axis=-1, keepdims=True), approx=True)
        p = (e * inv_l).astype(bf16)        # normalized probs, bf16 MXU operand
        ctx_parts.append(jnp.dot(p, vh, preferred_element_type=f32))  # (BS, DK)

    # Head-concat along lanes, then ONE output-projection matmul.
    ctx = jnp.concatenate(ctx_parts, axis=1).astype(bf16)             # (BS, DIM)
    o_ref[...] = jnp.dot(ctx, wo, preferred_element_type=f32) + bo


def prepare_params(params):
    """Build the fused parameter slabs ONCE (outside the per-call path)."""
    scale = 1.0 / math.sqrt(DK)
    w_slab = jnp.concatenate(
        [params['wq'].T * scale,            # fold 1/sqrt(dk) into Q projection
         params['wk'].T,
         params['wv'].T,
         params['wo'].T], axis=0).astype(jnp.bfloat16)            # (4*DIM, DIM)

    biases = jnp.stack([params['bq'] * scale, params['bk'],
                        params['bv'], params['bo']], axis=0)      # (4, DIM) f32
    bias_block = jnp.concatenate(
        [biases, jnp.zeros((4, DIM), jnp.float32)], axis=0)       # (8, DIM)

    # Block-diagonal (per-batch) additive mask over flattened rows, host-built.
    bidx = np.arange(BS) // S
    mask = np.where(bidx[:, None] == bidx[None, :], 0.0, -1e30).astype(np.float32)
    mask_block = np.zeros((BS, DIM), np.float32)
    mask_block[:, :BS] = mask

    misc_slab = jnp.concatenate([bias_block, jnp.asarray(mask_block)], axis=0)
    return w_slab, misc_slab                                      # (8+BS, DIM)


@jax.jit
def multi_head_attention(q, k, v, w_slab, misc_slab):
    # Flatten batch into rows (free bitcast reshape); no activation concat.
    q2 = q.reshape(BS, DIM)
    k2 = k.reshape(BS, DIM)
    v2 = v.reshape(BS, DIM)

    vmem = pl.BlockSpec(memory_space=pltpu.MemorySpace.VMEM)
    out = pl.pallas_call(
        mha_kernel,
        out_shape=jax.ShapeDtypeStruct((BS, DIM), jnp.float32),
        in_specs=[vmem] * 5,
        out_specs=vmem,
        cost_estimate=pl.CostEstimate(
            flops=163_840, transcendentals=1_100, bytes_accessed=19_456),
    )(q2, k2, v2, w_slab, misc_slab)
    return out.reshape(B, S, DIM)


def reference_mha(q, k, v, params):
    """Plain-JAX f32 reference reproducing the PyTorch forward (mask=None, eval)."""
    def lin(x, w, b):
        return x @ w.T + b
    qp = lin(q, params['wq'], params['bq']).reshape(B, S, H, DK).transpose(0, 2, 1, 3)
    kp = lin(k, params['wk'], params['bk']).reshape(B, S, H, DK).transpose(0, 2, 1, 3)
    vp = lin(v, params['wv'], params['bv']).reshape(B, S, H, DK).transpose(0, 2, 1, 3)
    scores = jnp.einsum('bhqd,bhkd->bhqk', qp, kp) / math.sqrt(DK)
    p = jax.nn.softmax(scores, axis=-1)
    ctx = jnp.einsum('bhqk,bhkd->bhqd', p, vp)
    concat = ctx.transpose(0, 2, 1, 3).reshape(B, S, DIM)
    return lin(concat, params['wo'], params['bo'])


if __name__ == "__main__":
    key = jax.random.PRNGKey(0)
    keys = jax.random.split(key, 12)

    # Deterministic parameter init (PyTorch-Linear-like uniform bound).
    bound = 1.0 / math.sqrt(DIM)
    params = {
        'wq': jax.random.uniform(keys[0], (DIM, DIM), jnp.float32, -bound, bound),
        'bq': jax.random.uniform(keys[1], (DIM,), jnp.float32, -bound, bound),
        'wk': jax.random.uniform(keys[2], (DIM, DIM), jnp.float32, -bound, bound),
        'bk': jax.random.uniform(keys[3], (DIM,), jnp.float32, -bound, bound),
        'wv': jax.random.uniform(keys[4], (DIM, DIM), jnp.float32, -bound, bound),
        'bv': jax.random.uniform(keys[5], (DIM,), jnp.float32, -bound, bound),
        'wo': jax.random.uniform(keys[6], (DIM, DIM), jnp.float32, -bound, bound),
        'bo': jax.random.uniform(keys[7], (DIM,), jnp.float32, -bound, bound),
    }

    q = jax.random.normal(keys[8], (B, S, DIM), jnp.float32)
    k = jax.random.normal(keys[9], (B, S, DIM), jnp.float32)
    v = jax.random.normal(keys[10], (B, S, DIM), jnp.float32)

    # Fused parameter slabs built once, reused across calls.
    w_slab, misc_slab = prepare_params(params)

    out = multi_head_attention(q, k, v, w_slab, misc_slab)
    out = jax.block_until_ready(out)

    ref = reference_mha(q, k, v, params)
    assert out.shape == (B, S, DIM)
    # Tolerance accommodates bf16 MXU operands (weights stored in bf16,
    # activations/probabilities cast in-kernel; ~2^-9 relative per operand)
    # plus the EUP approximate reciprocal in the softmax normalization.
    assert np.allclose(np.asarray(out), np.asarray(ref), atol=3e-2, rtol=3e-2)

    print("KERNEL_OK")
</pallas_src>

<mosaic_0001>
module attributes {stable_mosaic.version = 11 : i64} {
  func.func @mha_kernel(%arg0: memref<16x32xf32, #tpu.memory_space<vmem>>, %arg1: memref<16x32xf32, #tpu.memory_space<vmem>>, %arg2: memref<16x32xf32, #tpu.memory_space<vmem>>, %arg3: memref<128x32xbf16, #tpu.memory_space<vmem>>, %arg4: memref<24x32xf32, #tpu.memory_space<vmem>>, %arg5: memref<16x32xf32, #tpu.memory_space<vmem>>) attributes {dimension_semantics = [], scalar_prefetch = 0 : i64, scratch_operands = 0 : i64, tpu.core_type = #tpu.core_type<tc>} {
    %c0 = arith.constant 0 : index
    %c0_0 = arith.constant 0 : index
    %0 = vector.load %arg3[%c0, %c0_0] : memref<128x32xbf16, #tpu.memory_space<vmem>>, vector<32x32xbf16>
    %c32 = arith.constant 32 : index
    %c0_1 = arith.constant 0 : index
    %1 = vector.load %arg3[%c32, %c0_1] : memref<128x32xbf16, #tpu.memory_space<vmem>>, vector<32x32xbf16>
    %c64 = arith.constant 64 : index
    %c0_2 = arith.constant 0 : index
    %2 = vector.load %arg3[%c64, %c0_2] : memref<128x32xbf16, #tpu.memory_space<vmem>>, vector<32x32xbf16>
    %c96 = arith.constant 96 : index
    %c0_3 = arith.constant 0 : index
    %3 = vector.load %arg3[%c96, %c0_3] : memref<128x32xbf16, #tpu.memory_space<vmem>>, vector<32x32xbf16>
    %c0_4 = arith.constant 0 : index
    %c0_5 = arith.constant 0 : index
    %4 = vector.load %arg4[%c0_4, %c0_5] : memref<24x32xf32, #tpu.memory_space<vmem>>, vector<8x32xf32>
    %5 = vector.extract_strided_slice %4 {offsets = [0, 0], sizes = [1, 32], strides = [1, 1]} : vector<8x32xf32> to vector<1x32xf32>
    %6 = vector.extract_strided_slice %4 {offsets = [1, 0], sizes = [1, 32], strides = [1, 1]} : vector<8x32xf32> to vector<1x32xf32>
    %7 = vector.extract_strided_slice %4 {offsets = [2, 0], sizes = [1, 32], strides = [1, 1]} : vector<8x32xf32> to vector<1x32xf32>
    %8 = vector.extract_strided_slice %4 {offsets = [3, 0], sizes = [1, 32], strides = [1, 1]} : vector<8x32xf32> to vector<1x32xf32>
    %c8 = arith.constant 8 : index
    %c0_6 = arith.constant 0 : index
    %9 = vector.load %arg4[%c8, %c0_6] : memref<24x32xf32, #tpu.memory_space<vmem>>, vector<16x16xf32>
    %c0_7 = arith.constant 0 : index
    %c0_8 = arith.constant 0 : index
    %10 = vector.load %arg0[%c0_7, %c0_8] : memref<16x32xf32, #tpu.memory_space<vmem>>, vector<16x32xf32>
    %11 = arith.truncf %10 : vector<16x32xf32> to vector<16x32xbf16>
    %cst = arith.constant dense<0.000000e+00> : vector<16x32xf32>
    %12 = tpu.matmul %11, %0, %cst {dimension_numbers = #tpu.dot_dimension_numbers<[1], [0], [0], [1], [0, 0, 1, 1], [], []>} : vector<16x32xbf16>, vector<32x32xbf16>, vector<16x32xf32> -> vector<16x32xf32>
    %13 = vector.broadcast %5 : vector<1x32xf32> to vector<16x32xf32>
    %14 = arith.addf %12, %13 : vector<16x32xf32>
    %c0_9 = arith.constant 0 : index
    %c0_10 = arith.constant 0 : index
    %15 = vector.load %arg1[%c0_9, %c0_10] : memref<16x32xf32, #tpu.memory_space<vmem>>, vector<16x32xf32>
    %16 = arith.truncf %15 : vector<16x32xf32> to vector<16x32xbf16>
    %cst_11 = arith.constant dense<0.000000e+00> : vector<16x32xf32>
    %17 = tpu.matmul %16, %1, %cst_11 {dimension_numbers = #tpu.dot_dimension_numbers<[1], [0], [0], [1], [0, 0, 1, 1], [], []>} : vector<16x32xbf16>, vector<32x32xbf16>, vector<16x32xf32> -> vector<16x32xf32>
    %18 = vector.broadcast %6 : vector<1x32xf32> to vector<16x32xf32>
    %19 = arith.addf %17, %18 : vector<16x32xf32>
    %c0_12 = arith.constant 0 : index
    %c0_13 = arith.constant 0 : index
    %20 = vector.load %arg2[%c0_12, %c0_13] : memref<16x32xf32, #tpu.memory_space<vmem>>, vector<16x32xf32>
    %21 = arith.truncf %20 : vector<16x32xf32> to vector<16x32xbf16>
    %cst_14 = arith.constant dense<0.000000e+00> : vector<16x32xf32>
    %22 = tpu.matmul %21, %2, %cst_14 {dimension_numbers = #tpu.dot_dimension_numbers<[1], [0], [0], [1], [0, 0, 1, 1], [], []>} : vector<16x32xbf16>, vector<32x32xbf16>, vector<16x32xf32> -> vector<16x32xf32>
    %23 = vector.broadcast %7 : vector<1x32xf32> to vector<16x32xf32>
    %24 = arith.addf %22, %23 : vector<16x32xf32>
    %25 = tpu.transpose %19, [1, 0] : vector<16x32xf32> -> vector<32x16xf32>
    %26 = vector.extract_strided_slice %14 {offsets = [0, 0], sizes = [16, 8], strides = [1, 1]} : vector<16x32xf32> to vector<16x8xf32>
    %27 = arith.truncf %26 : vector<16x8xf32> to vector<16x8xbf16>
    %28 = vector.extract_strided_slice %25 {offsets = [0, 0], sizes = [8, 16], strides = [1, 1]} : vector<32x16xf32> to vector<8x16xf32>
    %29 = arith.truncf %28 : vector<8x16xf32> to vector<8x16xbf16>
    %30 = vector.extract_strided_slice %24 {offsets = [0, 0], sizes = [16, 8], strides = [1, 1]} : vector<16x32xf32> to vector<16x8xf32>
    %31 = arith.truncf %30 : vector<16x8xf32> to vector<16x8xbf16>
    %cst_15 = arith.constant dense<0.000000e+00> : vector<16x16xf32>
    %32 = tpu.matmul %27, %29, %cst_15 {dimension_numbers = #tpu.dot_dimension_numbers<[1], [0], [0], [1], [0, 0, 1, 1], [], []>} : vector<16x8xbf16>, vector<8x16xbf16>, vector<16x16xf32> -> vector<16x16xf32>
    %33 = arith.addf %32, %9 : vector<16x16xf32>
    %cst_16 = arith.constant dense<0xFF800000> : vector<16xf32>
    %34 = vector.multi_reduction <maximumf>, %33, %cst_16 [1] : vector<16x16xf32> to vector<16xf32>
    %35 = vector.shape_cast %34 : vector<16xf32> to vector<16x1xf32>
    %36 = vector.broadcast %35 : vector<16x1xf32> to vector<16x16xf32>
    %37 = arith.subf %33, %36 : vector<16x16xf32>
    %38 = math.exp %37 : vector<16x16xf32>
    %cst_17 = arith.constant dense<0.000000e+00> : vector<16xf32>
    %39 = vector.multi_reduction <add>, %38, %cst_17 [1] : vector<16x16xf32> to vector<16xf32>
    %40 = vector.shape_cast %39 : vector<16xf32> to vector<16x1xf32>
    %41 = tpu.reciprocal %40 {approx = true} : vector<16x1xf32> -> vector<16x1xf32>
    %42 = vector.broadcast %41 : vector<16x1xf32> to vector<16x16xf32>
    %43 = arith.mulf %38, %42 : vector<16x16xf32>
    %44 = arith.truncf %43 : vector<16x16xf32> to vector<16x16xbf16>
    %cst_18 = arith.constant dense<0.000000e+00> : vector<16x8xf32>
    %45 = tpu.matmul %44, %31, %cst_18 {dimension_numbers = #tpu.dot_dimension_numbers<[1], [0], [0], [1], [0, 0, 1, 1], [], []>} : vector<16x16xbf16>, vector<16x8xbf16>, vector<16x8xf32> -> vector<16x8xf32>
    %46 = vector.extract_strided_slice %14 {offsets = [0, 8], sizes = [16, 8], strides = [1, 1]} : vector<16x32xf32> to vector<16x8xf32>
    %47 = arith.truncf %46 : vector<16x8xf32> to vector<16x8xbf16>
    %48 = vector.extract_strided_slice %25 {offsets = [8, 0], sizes = [8, 16], strides = [1, 1]} : vector<32x16xf32> to vector<8x16xf32>
    %49 = arith.truncf %48 : vector<8x16xf32> to vector<8x16xbf16>
    %50 = vector.extract_strided_slice %24 {offsets = [0, 8], sizes = [16, 8], strides = [1, 1]} : vector<16x32xf32> to vector<16x8xf32>
    %51 = arith.truncf %50 : vector<16x8xf32> to vector<16x8xbf16>
    %cst_19 = arith.constant dense<0.000000e+00> : vector<16x16xf32>
    %52 = tpu.matmul %47, %49, %cst_19 {dimension_numbers = #tpu.dot_dimension_numbers<[1], [0], [0], [1], [0, 0, 1, 1], [], []>} : vector<16x8xbf16>, vector<8x16xbf16>, vector<16x16xf32> -> vector<16x16xf32>
    %53 = arith.addf %52, %9 : vector<16x16xf32>
    %cst_20 = arith.constant dense<0xFF800000> : vector<16xf32>
    %54 = vector.multi_reduction <maximumf>, %53, %cst_20 [1] : vector<16x16xf32> to vector<16xf32>
    %55 = vector.shape_cast %54 : vector<16xf32> to vector<16x1xf32>
    %56 = vector.broadcast %55 : vector<16x1xf32> to vector<16x16xf32>
    %57 = arith.subf %53, %56 : vector<16x16xf32>
    %58 = math.exp %57 : vector<16x16xf32>
    %cst_21 = arith.constant dense<0.000000e+00> : vector<16xf32>
    %59 = vector.multi_reduction <add>, %58, %cst_21 [1] : vector<16x16xf32> to vector<16xf32>
    %60 = vector.shape_cast %59 : vector<16xf32> to vector<16x1xf32>
    %61 = tpu.reciprocal %60 {approx = true} : vector<16x1xf32> -> vector<16x1xf32>
    %62 = vector.broadcast %61 : vector<16x1xf32> to vector<16x16xf32>
    %63 = arith.mulf %58, %62 : vector<16x16xf32>
    %64 = arith.truncf %63 : vector<16x16xf32> to vector<16x16xbf16>
    %cst_22 = arith.constant dense<0.000000e+00> : vector<16x8xf32>
    %65 = tpu.matmul %64, %51, %cst_22 {dimension_numbers = #tpu.dot_dimension_numbers<[1], [0], [0], [1], [0, 0, 1, 1], [], []>} : vector<16x16xbf16>, vector<16x8xbf16>, vector<16x8xf32> -> vector<16x8xf32>
    %66 = vector.extract_strided_slice %14 {offsets = [0, 16], sizes = [16, 8], strides = [1, 1]} : vector<16x32xf32> to vector<16x8xf32>
    %67 = arith.truncf %66 : vector<16x8xf32> to vector<16x8xbf16>
    %68 = vector.extract_strided_slice %25 {offsets = [16, 0], sizes = [8, 16], strides = [1, 1]} : vector<32x16xf32> to vector<8x16xf32>
    %69 = arith.truncf %68 : vector<8x16xf32> to vector<8x16xbf16>
    %70 = vector.extract_strided_slice %24 {offsets = [0, 16], sizes = [16, 8], strides = [1, 1]} : vector<16x32xf32> to vector<16x8xf32>
    %71 = arith.truncf %70 : vector<16x8xf32> to vector<16x8xbf16>
    %cst_23 = arith.constant dense<0.000000e+00> : vector<16x16xf32>
    %72 = tpu.matmul %67, %69, %cst_23 {dimension_numbers = #tpu.dot_dimension_numbers<[1], [0], [0], [1], [0, 0, 1, 1], [], []>} : vector<16x8xbf16>, vector<8x16xbf16>, vector<16x16xf32> -> vector<16x16xf32>
    %73 = arith.addf %72, %9 : vector<16x16xf32>
    %cst_24 = arith.constant dense<0xFF800000> : vector<16xf32>
    %74 = vector.multi_reduction <maximumf>, %73, %cst_24 [1] : vector<16x16xf32> to vector<16xf32>
    %75 = vector.shape_cast %74 : vector<16xf32> to vector<16x1xf32>
    %76 = vector.broadcast %75 : vector<16x1xf32> to vector<16x16xf32>
    %77 = arith.subf %73, %76 : vector<16x16xf32>
    %78 = math.exp %77 : vector<16x16xf32>
    %cst_25 = arith.constant dense<0.000000e+00> : vector<16xf32>
    %79 = vector.multi_reduction <add>, %78, %cst_25 [1] : vector<16x16xf32> to vector<16xf32>
    %80 = vector.shape_cast %79 : vector<16xf32> to vector<16x1xf32>
    %81 = tpu.reciprocal %80 {approx = true} : vector<16x1xf32> -> vector<16x1xf32>
    %82 = vector.broadcast %81 : vector<16x1xf32> to vector<16x16xf32>
    %83 = arith.mulf %78, %82 : vector<16x16xf32>
    %84 = arith.truncf %83 : vector<16x16xf32> to vector<16x16xbf16>
    %cst_26 = arith.constant dense<0.000000e+00> : vector<16x8xf32>
    %85 = tpu.matmul %84, %71, %cst_26 {dimension_numbers = #tpu.dot_dimension_numbers<[1], [0], [0], [1], [0, 0, 1, 1], [], []>} : vector<16x16xbf16>, vector<16x8xbf16>, vector<16x8xf32> -> vector<16x8xf32>
    %86 = vector.extract_strided_slice %14 {offsets = [0, 24], sizes = [16, 8], strides = [1, 1]} : vector<16x32xf32> to vector<16x8xf32>
    %87 = arith.truncf %86 : vector<16x8xf32> to vector<16x8xbf16>
    %88 = vector.extract_strided_slice %25 {offsets = [24, 0], sizes = [8, 16], strides = [1, 1]} : vector<32x16xf32> to vector<8x16xf32>
    %89 = arith.truncf %88 : vector<8x16xf32> to vector<8x16xbf16>
    %90 = vector.extract_strided_slice %24 {offsets = [0, 24], sizes = [16, 8], strides = [1, 1]} : vector<16x32xf32> to vector<16x8xf32>
    %91 = arith.truncf %90 : vector<16x8xf32> to vector<16x8xbf16>
    %cst_27 = arith.constant dense<0.000000e+00> : vector<16x16xf32>
    %92 = tpu.matmul %87, %89, %cst_27 {dimension_numbers = #tpu.dot_dimension_numbers<[1], [0], [0], [1], [0, 0, 1, 1], [], []>} : vector<16x8xbf16>, vector<8x16xbf16>, vector<16x16xf32> -> vector<16x16xf32>
    %93 = arith.addf %92, %9 : vector<16x16xf32>
    %cst_28 = arith.constant dense<0xFF800000> : vector<16xf32>
    %94 = vector.multi_reduction <maximumf>, %93, %cst_28 [1] : vector<16x16xf32> to vector<16xf32>
    %95 = vector.shape_cast %94 : vector<16xf32> to vector<16x1xf32>
    %96 = vector.broadcast %95 : vector<16x1xf32> to vector<16x16xf32>
    %97 = arith.subf %93, %96 : vector<16x16xf32>
    %98 = math.exp %97 : vector<16x16xf32>
    %cst_29 = arith.constant dense<0.000000e+00> : vector<16xf32>
    %99 = vector.multi_reduction <add>, %98, %cst_29 [1] : vector<16x16xf32> to vector<16xf32>
    %100 = vector.shape_cast %99 : vector<16xf32> to vector<16x1xf32>
    %101 = tpu.reciprocal %100 {approx = true} : vector<16x1xf32> -> vector<16x1xf32>
    %102 = vector.broadcast %101 : vector<16x1xf32> to vector<16x16xf32>
    %103 = arith.mulf %98, %102 : vector<16x16xf32>
    %104 = arith.truncf %103 : vector<16x16xf32> to vector<16x16xbf16>
    %cst_30 = arith.constant dense<0.000000e+00> : vector<16x8xf32>
    %105 = tpu.matmul %104, %91, %cst_30 {dimension_numbers = #tpu.dot_dimension_numbers<[1], [0], [0], [1], [0, 0, 1, 1], [], []>} : vector<16x16xbf16>, vector<16x8xbf16>, vector<16x8xf32> -> vector<16x8xf32>
    %106 = tpu.concatenate %45, %65, %85, %105 in 1 : vector<16x8xf32>, vector<16x8xf32>, vector<16x8xf32>, vector<16x8xf32> -> vector<16x32xf32>
    %107 = arith.truncf %106 : vector<16x32xf32> to vector<16x32xbf16>
    %cst_31 = arith.constant dense<0.000000e+00> : vector<16x32xf32>
    %108 = tpu.matmul %107, %3, %cst_31 {dimension_numbers = #tpu.dot_dimension_numbers<[1], [0], [0], [1], [0, 0, 1, 1], [], []>} : vector<16x32xbf16>, vector<32x32xbf16>, vector<16x32xf32> -> vector<16x32xf32>
    %109 = vector.broadcast %8 : vector<1x32xf32> to vector<16x32xf32>
    %110 = arith.addf %108, %109 : vector<16x32xf32>
    %c0_32 = arith.constant 0 : index
    %c0_33 = arith.constant 0 : index
    %111 = vector.load %arg5[%c0_32, %c0_33] : memref<16x32xf32, #tpu.memory_space<vmem>>, vector<16x32xf32>
    tpu.vector_store %arg5[%c0_32, %c0_33], %110 {strides = array<i32>} : memref<16x32xf32, #tpu.memory_space<vmem>>, vector<16x32xf32>,
    return
  }
}

</mosaic_0001>

<bundles_post_ra>
// kernel: multi_head_attention.1
= control target key start
LH: loop header
LB: loop body
LE: loop exit
PB: predicated region body
PF: predicated region fallthrough
CT: control target
= control target key end

     0   :  { %v1072_v1 = vmov 0.0   ;;  %vm1073_vm0 = vmmov 0   ;;  %vm60_vm1 = vcmask 261120   ;;  %s1293_s0 = inlined_call_operand.vmem [shape: f32[16,32], index: 0, kind: input, shape index: {}]   ;;  %s1294_s1 = inlined_call_operand.vmem [shape: f32[16,32], index: 1, kind: input, shape index: {}]   ;;  %s1295_s2 = inlined_call_operand.vmem [shape: f32[16,32], index: 2, kind: input, shape index: {}]   ;;  %s1296_s3 = inlined_call_operand.vmem [shape: bf16[128,32], index: 3, kind: input, shape index: {}]   ;;  %s1297_s4 = inlined_call_operand.vmem [shape: f32[24,32], index: 4, kind: input, shape index: {}]   ;;  %s1298_s5 = inlined_call_operand.hbm [shape: f32[16,32], index: 5, kind: output, shape index: {}]  }
   0x1   :  { %v1008_v0 = vld [vmem:[%s1296_s3 + $0x10] sm:$0xff]   ;;  %911 = vmatprep.subr.bf16.mxu1 %v1072_v1  ;;  %v1009_v2 = vld [vmem:[%s1296_s3 + $0x18] sm:$0xff]   ;;  %903 = vmatprep.subr.bf16.mxu0 %v1072_v1  ;;  %v105_v3 = vld [vmem:[%s1294_s1] sm:$0xff] }
   0x2   :  { %912 = vmatpush3.bf16.msra.mxu1 %v1008_v0  ;;  %915 = vmatprep.mubr.msk.bf16.mxu1 %vm1073_vm0, %v1072_v1  ;;  %v106_v4 = vld [vmem:[%s1294_s1 + $0x8] sm:$0xff]  ;;  %v1010_v5 = vld [vmem:[%s1296_s3] sm:$0xff]  }
   0x3   :  { %913 = vmatprep.subr.bf16.mxu1 %v1072_v1  ;;  %907 = vmatprep.mubr.msk.bf16.mxu0 %vm1073_vm0, %v1072_v1  ;;  %v1011_v6 = vld [vmem:[%s1296_s3 + $0x8] sm:$0xff]   ;;  %v41_v7 = vld [vmem:[%s1293_s0] sm:$0xff]  ;;  %v107_v8 = vpack.c.bf16 %v106_v4, %v105_v3 }
   0x4   :  { %904 = vmatpush3.bf16.msra.mxu0 %v1010_v5  ;;  %v42_v9 = vld [vmem:[%s1293_s0 + $0x8] sm:$0xff] }
   0x5   :  { %905 = vmatprep.subr.bf16.mxu0 %v1072_v1  ;;  %v43_v10 = vpack.c.bf16 %v42_v9, %v41_v7 }
   0x6   :  { %914 = vmatpush3.bf16.msra.mxu1 %v1009_v2 }
   0x7   :  { %927 = vmatprep.subr.bf16.mxu1 %v1072_v1 }
   0x8   :  { %10 = vsyncpa [#allocation3], 0  ;;  %906 = vmatpush3.bf16.msra.mxu0 %v1011_v6  ;;  %v44_v11 = vlaneseq  ;;  %v1158_v14 = vld [vmem:[%s1297_s4] sm:$0xff]  ;;  %s1074_s9 = smov 120   ;;  %s1075_s10 = smov 112   ;;  %v1013_v32 = vld [vmem:[%s1296_s3 + $0x28] sm:$0xff]  }
   0x9   :  { %916 = vmatmul.mubr.msk.bf16.vlgmr.msra.gmra.mrb[0].mxu1 %vm60_vm1, %v107_v8  ;;  %919 = vmatprep.subr.bf16.mxu0 %v1072_v1  ;;  %s1076_s11 = smov 104   ;;  %v1012_v31 = vld [vmem:[%s1296_s3 + $0x20] sm:$0xff]   ;;  %v169_v34 = vld [vmem:[%s1295_s2 + $0x8] sm:$0xff]  ;;  %vm270_vm2 = vcmask 1043456   ;;  %vm266_vm3 = vcmask 64512   ;;  %v40_v53 = vld [vmem:[%s1297_s4 + $0x10] sm:$0xff] }
   0xa   :  { %929 = vmatprep.mubr.msk.bf16.mxu1 %vm1073_vm0, %v1072_v1  ;;  %v1152_v12 = vshrl.u32 %v44_v11, 7  ;;  %v168_v33 = vld [vmem:[%s1295_s2] sm:$0xff]  ;;  %v39_v51 = vld [vmem:[%s1297_s4 + $0x8] sm:$0xff]  ;;  %vm315_vm4 = vcmask 130048   ;;  %s1077_s24 = smov 8   ;;  %s1078_s27 = smov 16  }
   0xb   :  { %908 = vmatmul.mubr.msk.bf16.vlgmr.msra.gmra.mrb[0].mxu0 %vm60_vm1, %v43_v10  ;;  %v170_v35 = vpack.c.bf16 %v169_v34, %v168_v33  ;;  %s1079_s28 = smov 24   ;;  %vm773_vm5 = vcmask 195584  }
   0xc   :  { %923 = vmatprep.mubr.msk.bf16.mxu0 %vm1073_vm0, %v1072_v1  ;;  %v110_v13 = vsub.s32 1, %v1152_v12  ;;  %v46_v15 = vsub.s32 0, %v1152_v12  ;;  %920 = vmatpush3.bf16.msra.mxu0 %v1012_v31 }
   0xd   :  { %921 = vmatprep.subr.bf16.mxu0 %v1072_v1 }
   0xe   :  { %v111_v16 = vrot.slane %v1158_v14, %v110_v13  ;;  %v47_v18 = vrot.slane %v1158_v14, %v46_v15 }
  0x10   :  { %922 = vmatpush3.bf16.msra.mxu0 %v1013_v32 }
  0x11   :  { %933 = vmatprep.subr.bf16.mxu0 %v1072_v1 }
  0x13   :  { %924 = vmatmul.mubr.msk.bf16.vlgmr.msra.gmra.mrb[4].mxu0 %vm60_vm1, %v170_v35 }
  0x14   :  { %935 = vmatprep.mubr.msk.bf16.mxu0 %vm1073_vm0, %v1072_v1 }
  0xdc   :  { %v161_v17 = vpop.f32.mrb[0].mxu1 }
  0xdd   :  { %v917_v19 = vpop.f32.mrb[1].mxu1  ;;  %v162_v20 = vadd.f32 %v161_v17, %v111_v16 }
  0xde   :  { %v164_v21 = vpop.f32.mrb[2].mxu1  ;;  %v98_v23 = vpop.f32.mrb[0].mxu0 }
  0xdf   :  { %231 = vxpose.xlu1.b32.start [1/2] (short) (narrow) %v162_v20, 32  ;;  %v918_v22 = vpop.f32.mrb[3].mxu1  ;;  %v99_v24 = vadd.f32 %v98_v23, %v47_v18  ;;  %v909_v25 = vpop.f32.mrb[1].mxu0  ;;  %v165_v26 = vadd.f32 %v164_v21, %v111_v16 }
  0xe0   :  { %v101_v27 = vpop.f32.mrb[2].mxu0 }
  0xe1   :  { %v102_v28 = vadd.f32 %v101_v27, %v47_v18  ;;  %v910_v29 = vpop.f32.mrb[3].mxu0 }
  0xe3   :  { %232 = vxpose.xlu1.b32.end [2/2] (short) (narrow) %v165_v26, 32  ;;  %v263_v30 = vpack.c.bf16 %v102_v28, %v99_v24  ;;  %v173_v24 = vsub.s32 2, %v1152_v12 }
  0xe5   :  { %385 = vrot.lane.b32.xlu0 %v263_v30, %s1074_s9  ;;  %v174_v27 = vrot.slane %v1158_v14, %v173_v24 }
  0xe6   :  { %v224_v25 = vpop.f32.mrb[4].mxu0 }
  0xe7   :  { %v925_v26 = vpop.f32.mrb[5].mxu0 }
  0xe8   :  { %v227_v28 = vpop.f32.mrb[6].mxu0 }
  0xe9   :  { %506 = vrot.lane.b32.xlu0 %v263_v30, %s1075_s10  ;;  %v926_v29 = vpop.f32.mrb[7].mxu0  ;;  %v228_v31 = vadd.f32 %v227_v28, %v174_v27 }
  0xed   :  { %626 = vrot.lane.b32.xlu0 %v263_v30, %s1076_s11 }
 0x157   :  { %v386_v44 = vpop.permute.xlu0 %385 }
 0x15b   :  { %v507_v48 = vpop.permute.xlu0 %506 }
 0x15f   :  { %v247_v36 = vpop.trf.xlu1  ;;  %v627_v50 = vpop.permute.xlu0 %626 }
 0x160   :  { %v264_v37 = vpack.c.bf16 %v247_v36, %v247_v36 }
 0x162   :  { %v272_v38 = vsel %vm270_vm2, %v264_v37, 0 }
 0x163   :  { %928 = vmatpush3.bf16.msra.mxu1 %v272_v38  ;;  %v248_v39 = vpop.trf.xlu1 }
 0x164   :  { %v383_v40 = vpack.c.bf16 %v248_v39, %v248_v39  ;;  %939 = vmatprep.subr.bf16.mxu1 %v1072_v1 }
 0x166   :  { %930 = vmatmul.mubr.msk.bf16.vlgmr.msra.gmra.mrb[4].mxu1 %vm266_vm3, %v263_v30  ;;  %v391_v41 = vsel %vm270_vm2, %v383_v40, 0  ;;  %v225_v30 = vadd.f32 %v224_v25, %v174_v27 }
 0x167   :  { %940 = vmatpush3.bf16.msra.mxu1 %v391_v41  ;;  %941 = vmatprep.mubr.msk.bf16.mxu1 %vm1073_vm0, %v1072_v1  ;;  %v249_v42 = vpop.trf.xlu1 }
 0x168   :  { %v505_v43 = vpack.c.bf16 %v249_v42, %v249_v42  ;;  %951 = vmatprep.subr.bf16.mxu1 %v1072_v1  ;;  %v265_v32 = vpack.c.bf16 %v228_v31, %v225_v30 }
 0x16a   :  { %v512_v45 = vsel %vm270_vm2, %v505_v43, 0  ;;  %934 = vmatpush3.bf16.msra.mxu0 %v265_v32 }
 0x16b   :  { %v250_v46 = vpop.trf.xlu1  ;;  %945 = vmatprep.subr.bf16.mxu0 %v1072_v1 }
 0x16c   :  { %v625_v47 = vpack.c.bf16 %v250_v46, %v250_v46 }
 0x16e   :  { %942 = vmatmul.mubr.msk.bf16.vlgmr.msra.gmra.mrb[8].mxu1 %vm266_vm3, %v386_v44  ;;  %v632_v49 = vsel %vm270_vm2, %v625_v47, 0 }
 0x16f   :  { %952 = vmatpush3.bf16.msra.mxu1 %v512_v45  ;;  %953 = vmatprep.mubr.msk.bf16.mxu1 %vm1073_vm0, %v1072_v1 }
 0x170   :  { %963 = vmatprep.subr.bf16.mxu1 %v1072_v1 }
 0x176   :  { %954 = vmatmul.mubr.msk.bf16.vlgmr.msra.gmra.mrb[12].mxu1 %vm266_vm3, %v507_v48 }
 0x177   :  { %964 = vmatpush3.bf16.msra.mxu1 %v632_v49  ;;  %965 = vmatprep.mubr.msk.bf16.mxu1 %vm1073_vm0, %v1072_v1 }
 0x178   :  { %975 = vmatprep.subr.bf16.mxu1 %v1072_v1 }
 0x17e   :  { %966 = vmatmul.mubr.msk.bf16.vlgmr.msra.gmra.mrb[16].mxu1 %vm266_vm3, %v627_v50 }
 0x17f   :  { %979 = vmatprep.mubr.msk.bf16.mxu1 %vm1073_vm0, %v1072_v1 }
 0x239   :  { %v308_v52 = vpop.f32.mrb[4].mxu1 }
 0x23a   :  { %v309_v54 = vadd.f32 %v308_v52, %v39_v51  ;;  %v931_v55 = vpop.f32.mrb[5].mxu1 }
 0x23b   :  { %v311_v56 = vpop.f32.mrb[6].mxu1 }
 0x23c   :  { %v312_v57 = vadd.f32 %v311_v56, %v40_v53  ;;  %v932_v58 = vpop.f32.mrb[7].mxu1  ;;  %v316_v59 = vsel %vm315_vm4, %v309_v54, -inf }
 0x23d   :  { %317 = vmax.xlane.f32.xlu1 %v316_v59 }
 0x23e   :  { %v319_v60 = vsel %vm315_vm4, %v312_v57, -inf }
 0x23f   :  { %320 = vmax.xlane.f32.xlu0 %v319_v60 }
 0x241   :  { %v427_v61 = vpop.f32.mrb[8].mxu1 }
 0x242   :  { %v1211_v62 = vadd.f32 %v427_v61, %v39_v51  ;;  %v943_v63 = vpop.f32.mrb[9].mxu1 }
 0x243   :  { %v430_v0 = vpop.f32.mrb[10].mxu1 }
 0x244   :  { %v434_v2 = vsel %vm315_vm4, %v1211_v62, -inf  ;;  %v431_v3 = vadd.f32 %v430_v0, %v40_v53  ;;  %v944_v4 = vpop.f32.mrb[11].mxu1 }
 0x245   :  { %435 = vmax.xlane.f32.xlu0 %v434_v2 }
 0x246   :  { %v437_v5 = vsel %vm315_vm4, %v431_v3, -inf }
 0x249   :  { %438 = vmax.xlane.f32.xlu0 %v437_v5  ;;  %v548_v6 = vpop.f32.mrb[12].mxu1 }
 0x24a   :  { %v1216_v7 = vadd.f32 %v548_v6, %v39_v51  ;;  %v955_v8 = vpop.f32.mrb[13].mxu1 }
 0x24b   :  { %v551_v9 = vpop.f32.mrb[14].mxu1 }
 0x24c   :  { %v555_v10 = vsel %vm315_vm4, %v1216_v7, -inf  ;;  %v552_v11 = vadd.f32 %v551_v9, %v40_v53  ;;  %v956_v13 = vpop.f32.mrb[15].mxu1 }
 0x24d   :  { %556 = vmax.xlane.f32.xlu0 %v555_v10 }
 0x24e   :  { %v558_v15 = vsel %vm315_vm4, %v552_v11, -inf }
 0x251   :  { %559 = vmax.xlane.f32.xlu0 %v558_v15  ;;  %v668_v16 = vpop.f32.mrb[16].mxu1 }
 0x252   :  { %v1221_v17 = vadd.f32 %v668_v16, %v39_v51  ;;  %v967_v18 = vpop.f32.mrb[17].mxu1 }
 0x253   :  { %v671_v19 = vpop.f32.mrb[18].mxu1 }
 0x254   :  { %v672_v20 = vadd.f32 %v671_v19, %v40_v53  ;;  %v675_v21 = vsel %vm315_vm4, %v1221_v17, -inf  ;;  %v968_v22 = vpop.f32.mrb[19].mxu1 }
 0x255   :  { %676 = vmax.xlane.f32.xlu1 %v675_v21 }
 0x256   :  { %v678_v23 = vsel %vm315_vm4, %v672_v20, -inf }
 0x257   :  { %679 = vmax.xlane.f32.xlu0 %v678_v23 }
 0x2ca   :  { %v318_v33 = vpop.xlane.xlu1 %317 }
 0x2cb   :  { %v322_v34 = vsub.f32 %v309_v54, %v318_v33 }
 0x2cc   :  { %v321_v35 = vpop.xlane.xlu0 %320 }
 0x2cd   :  { %v324_v36 = vmul.f32 1.442695, %v322_v34  ;;  %v323_v37 = vsub.f32 %v312_v57, %v321_v35 }
 0x2cf   :  { %1016 = vpow2.f32 %v324_v36  ;;  %v326_v38 = vmul.f32 1.442695, %v323_v37 }
 0x2d1   :  { %1018 = vpow2.f32 %v326_v38 }
 0x2d2   :  { %v436_v39 = vpop.xlane.xlu0 %435 }
 0x2d3   :  { %v440_v60 = vsub.f32 %v1211_v62, %v436_v39 }
 0x2d5   :  { %v442_v61 = vmul.f32 1.442695, %v440_v60 }
 0x2d6   :  { %v439_v40 = vpop.xlane.xlu0 %438 }
 0x2d7   :  { %v441_v41 = vsub.f32 %v431_v3, %v439_v40 }
 0x2d9   :  { %v1017_v42 = vpop.eup %1016  ;;  %v444_v43 = vmul.f32 1.442695, %v441_v41 }
 0x2da   :  { %v557_v44 = vpop.xlane.xlu0 %556  ;;  %v328_v45 = vsel %vm315_vm4, %v1017_v42, 0.0 }
 0x2db   :  { %v1019_v46 = vpop.eup %1018  ;;  %1020 = vpow2.f32 %v444_v43  ;;  %329 = vadd.xlane.f32.xlu1 %v328_v45  ;;  %v561_v63 = vsub.f32 %v1216_v7, %v557_v44 }
 0x2dc   :  { %v331_v47 = vsel %vm315_vm4, %v1019_v46, 0.0 }
 0x2dd   :  { %332 = vadd.xlane.f32.xlu0 %v331_v47  ;;  %v563_v2 = vmul.f32 1.442695, %v561_v63 }
 0x2de   :  { %v560_v48 = vpop.xlane.xlu0 %559 }
 0x2df   :  { %v562_v49 = vsub.f32 %v552_v11, %v560_v48 }
 0x2e1   :  { %v565_v50 = vmul.f32 1.442695, %v562_v49 }
 0x2e2   :  { %v677_v0 = vpop.xlane.xlu1 %676 }
 0x2e3   :  { %1022 = vpow2.f32 %v565_v50  ;;  %v681_v3 = vsub.f32 %v1221_v17, %v677_v0  ;;  %v1014_v50 = vld [vmem:[%s1296_s3 + $0x30] sm:$0xff]  }
 0x2e4   :  { %v680_v51 = vpop.xlane.xlu0 %679  ;;  %976 = vmatpush3.bf16.msra.mxu1 %v1014_v50 }
 0x2e5   :  { %v1021_v52 = vpop.eup %1020  ;;  %v682_v53 = vsub.f32 %v672_v20, %v680_v51  ;;  %v683_v4 = vmul.f32 1.442695, %v681_v3  ;;  %977 = vmatprep.subr.bf16.mxu1 %v1072_v1 }
 0x2e6   :  { %v449_v54 = vsel %vm315_vm4, %v1021_v52, 0.0 }
 0x2e7   :  { %v685_v55 = vmul.f32 1.442695, %v682_v53  ;;  %450 = vadd.xlane.f32.xlu0 %v449_v54 }
 0x2e9   :  { %1024 = vpow2.f32 %v685_v55  ;;  %v1015_v55 = vld [vmem:[%s1296_s3 + $0x38] sm:$0xff]   ;;  %s1080_s3 = smov [#allocation2]  }
 0x2ea   :  { %1026 = vpow2.f32 %v442_v61  ;;  %978 = vmatpush3.bf16.msra.mxu1 %v1015_v55  ;;  %s844_s29 = sshll.u32 %s1080_s3, 4  ;;  %s845_s29 = int_to_ptr.vmem [resolvable:$true] %s844_s29 }
 0x2eb   :  { %1028 = vpow2.f32 %v563_v2  ;;  %s1048_s30 = scalar_lea.vmem %s845_s29, 256  ;;  %p1053_p1 = scmp.lt.s32.totalorder %s845_s29, %s845_s29 }
 0x2ec   :  { %458 = vrot.lane.b32.xlu1 %v265_v32, %s1074_s9  ;;  %1030 = vpow2.f32 %v683_v4  ;;  %p1049_p0 = scmp.ne.s32.totalorder %s845_s29, %s1048_s30  ;;  %p1054_p2 = scmp.lt.s32.totalorder %s1048_s30, %s1048_s30 }
 0x2ed   :  { %v1233_v56 = vpop.eup %1022 }
 0x2ee   :  { %v570_v57 = vsel %vm315_vm4, %v1233_v56, 0.0  ;;  %p1055_p3 = por %p1054_p2, %p1053_p1 }
 0x2ef   :  { %571 = vadd.xlane.f32.xlu0 %v570_v57 }
 0x2f0   :  { %p1056_p4 = pnand %p1055_p3, %p1049_p0 }
 0x2f3   :  { %v1237_v58 = vpop.eup %1024 }
 0x2f4   :  { %v690_v59 = vsel %vm315_vm4, %v1237_v58, 0.0  ;;  %v1027_v5 = vpop.eup %1026 }
 0x2f5   :  { %691 = vadd.xlane.f32.xlu0 %v690_v59  ;;  %v446_v6 = vsel %vm315_vm4, %v1027_v5, 0.0  ;;  %v1029_v8 = vpop.eup %1028 }
 0x2f6   :  { %v567_v62 = vsel %vm315_vm4, %v1029_v8, 0.0  ;;  %v1031_v9 = vpop.eup %1030 }
 0x2f7   :  { %v687_v7 = vsel %vm315_vm4, %v1031_v9, 0.0 }
 0x30b   :  { %578 = vrot.lane.b32.xlu0 %v265_v32, %s1075_s10 }
 0x310   :  { %447 = vadd.xlane.f32.xlu1 %v446_v6 }
 0x314   :  { %568 = vadd.xlane.f32.xlu1 %v567_v62 }
 0x318   :  { %688 = vadd.xlane.f32.xlu1 %v687_v7 }
 0x329   :  { %698 = vrot.lane.b32.xlu1 %v265_v32, %s1076_s11 }
 0x368   :  { %v330_v10 = vpop.xlane.xlu1 %329 }
 0x369   :  { %1032 = vrcp.f32 %v330_v10 }
 0x36a   :  { %v333_v11 = vpop.xlane.xlu0 %332 }
 0x36b   :  { %1034 = vrcp.f32 %v333_v11 }
 0x36c   :  { %v459_v19 = vpop.permute.xlu1 %458 }
 0x373   :  { %v1033_v13 = vpop.eup %1032 }
 0x374   :  { %v336_v16 = vmul.f32 %v1033_v13, %v1017_v42  ;;  %v451_v20 = vpop.xlane.xlu0 %450 }
 0x375   :  { %v1035_v15 = vpop.eup %1034  ;;  %1036 = vrcp.f32 %v451_v20 }
 0x376   :  { %v337_v17 = vmul.f32 %v1035_v15, %v1019_v46 }
 0x378   :  { %v338_v18 = vpack.c.bf16 %v337_v17, %v336_v16 }
 0x37a   :  { %936 = vmatmul.mubr.msk.bf16.vlgmr.msra.gmra.mrb[8].mxu0 %vm315_vm4, %v338_v18  ;;  %v779_v18 = vsub.s32 3, %v1152_v12 }
 0x37b   :  { %946 = vmatpush3.bf16.msra.mxu0 %v459_v19  ;;  %947 = vmatprep.mubr.msk.bf16.mxu0 %vm1073_vm0, %v1072_v1 }
 0x37c   :  { %957 = vmatprep.subr.bf16.mxu0 %v1072_v1  ;;  %v572_v22 = vpop.xlane.xlu0 %571  ;;  %v780_v19 = vrot.slane %v1158_v14, %v779_v18 }
 0x37f   :  { %v1037_v24 = vpop.eup %1036 }
 0x380   :  { %v455_v28 = vmul.f32 %v1037_v24, %v1021_v52 }
 0x382   :  { %v692_v25 = vpop.xlane.xlu0 %691 }
 0x386   :  { %v579_v32 = vpop.permute.xlu0 %578 }
 0x39d   :  { %v448_v21 = vpop.xlane.xlu1 %447 }
 0x39e   :  { %1038 = vrcp.f32 %v448_v21 }
 0x3a1   :  { %v569_v23 = vpop.xlane.xlu1 %568 }
 0x3a2   :  { %1040 = vrcp.f32 %v569_v23 }
 0x3a3   :  { %1042 = vrcp.f32 %v572_v22 }
 0x3a5   :  { %v689_v26 = vpop.xlane.xlu1 %688 }
 0x3a6   :  { %1044 = vrcp.f32 %v689_v26 }
 0x3a7   :  { %1046 = vrcp.f32 %v692_v25 }
 0x3a8   :  { %v1039_v27 = vpop.eup %1038 }
 0x3a9   :  { %v454_v29 = vmul.f32 %v1039_v27, %v1027_v5  ;;  %v699_v38 = vpop.permute.xlu1 %698 }
 0x3ab   :  { %v456_v30 = vpack.c.bf16 %v455_v28, %v454_v29 }
 0x3ac   :  { %v1041_v31 = vpop.eup %1040 }
 0x3ad   :  { %948 = vmatmul.mubr.msk.bf16.vlgmr.msra.gmra.mrb[12].mxu0 %vm315_vm4, %v456_v30  ;;  %v1043_v33 = vpop.eup %1042  ;;  %v575_v34 = vmul.f32 %v1041_v31, %v1029_v8 }
 0x3ae   :  { %958 = vmatpush3.bf16.msra.mxu0 %v579_v32  ;;  %959 = vmatprep.mubr.msk.bf16.mxu0 %vm1073_vm0, %v1072_v1  ;;  %v576_v35 = vmul.f32 %v1043_v33, %v1233_v56 }
 0x3af   :  { %969 = vmatprep.subr.bf16.mxu0 %v1072_v1 }
 0x3b0   :  { %v577_v36 = vpack.c.bf16 %v576_v35, %v575_v34  ;;  %v1045_v37 = vpop.eup %1044 }
 0x3b1   :  { %v1047_v39 = vpop.eup %1046  ;;  %v695_v40 = vmul.f32 %v1045_v37, %v1031_v9 }
 0x3b2   :  { %v696_v41 = vmul.f32 %v1047_v39, %v1237_v58 }
 0x3b4   :  { %v697_v42 = vpack.c.bf16 %v696_v41, %v695_v40 }
 0x3b5   :  { %960 = vmatmul.mubr.msk.bf16.vlgmr.msra.gmra.mrb[16].mxu0 %vm315_vm4, %v577_v36 }
 0x3b6   :  { %970 = vmatpush3.bf16.msra.mxu0 %v699_v38  ;;  %971 = vmatprep.mubr.msk.bf16.mxu0 %vm1073_vm0, %v1072_v1 }
 0x3bd   :  { %972 = vmatmul.mubr.msk.bf16.vlgmr.msra.gmra.mrb[20].mxu0 %vm315_vm4, %v697_v42 }
 0x44d   :  { %v376_v43 = vpop.f32.mrb[8].mxu0 }
 0x44e   :  { %v937_v44 = vpop.f32.mrb[9].mxu0 }
 0x44f   :  { %v379_v45 = vpop.f32.mrb[10].mxu0 }
 0x450   :  { %v938_v46 = vpop.f32.mrb[11].mxu0 }
 0x480   :  { %v498_v47 = vpop.f32.mrb[12].mxu0 }
 0x481   :  { %v949_v48 = vpop.f32.mrb[13].mxu0 }
 0x482   :  { %v501_v49 = vpop.f32.mrb[14].mxu0 }
 0x483   :  { %v993_v51 = vpack.i.bf16 %v501_v49, %v498_v47  ;;  %v950_v52 = vpop.f32.mrb[15].mxu0 }
 0x485   :  { %994 = vrot.lane.b32.xlu1 %v993_v51, %s1077_s24 }
 0x488   :  { %v618_v53 = vpop.f32.mrb[16].mxu0 }
 0x489   :  { %v961_v54 = vpop.f32.mrb[17].mxu0 }
 0x48a   :  { %v621_v56 = vpop.f32.mrb[18].mxu0 }
 0x48b   :  { %v998_v57 = vpack.i.bf16 %v621_v56, %v618_v53  ;;  %v962_v58 = vpop.f32.mrb[19].mxu0 }
 0x48d   :  { %999 = vrot.lane.b32.xlu1 %v998_v57, %s1078_s27 }
 0x490   :  { %v738_v59 = vpop.f32.mrb[20].mxu0 }
 0x491   :  { %v973_v60 = vpop.f32.mrb[21].mxu0 }
 0x492   :  { %v741_v61 = vpop.f32.mrb[22].mxu0 }
 0x493   :  { %v1003_v63 = vpack.i.bf16 %v741_v61, %v738_v59  ;;  %v974_v0 = vpop.f32.mrb[23].mxu0 }
 0x495   :  { %1004 = vrot.lane.b32.xlu0 %v1003_v63, %s1079_s28 }
 0x4f7   :  { %v995_v1 = vpop.permute.xlu1 %994 }
 0x4f8   :  { %v997_v3 = vunpack.i.h.bf16 %v995_v1  ;;  %v996_v4 = vunpack.i.l.bf16 %v995_v1 }
 0x4fa   :  { %v770_v62 = vsel %vm266_vm3, %v379_v45, %v997_v3  ;;  %v769_v9 = vsel %vm266_vm3, %v376_v43, %v996_v4 }
 0x4ff   :  { %v1000_v2 = vpop.permute.xlu1 %999 }
 0x500   :  { %v1002_v5 = vunpack.i.h.bf16 %v1000_v2  ;;  %v1001_v6 = vunpack.i.l.bf16 %v1000_v2 }
 0x502   :  { %v772_v11 = vsel %vm315_vm4, %v770_v62, %v1002_v5  ;;  %v771_v13 = vsel %vm315_vm4, %v769_v9, %v1001_v6 }
 0x507   :  { %v1005_v8 = vpop.permute.xlu0 %1004 }
 0x508   :  { %v1007_v7 = vunpack.i.h.bf16 %v1005_v8  ;;  %v1006_v10 = vunpack.i.l.bf16 %v1005_v8 }
 0x50a   :  { %v775_v15 = vsel %vm773_vm5, %v772_v11, %v1007_v7  ;;  %v774_v16 = vsel %vm773_vm5, %v771_v13, %v1006_v10 }
 0x50b   :  { %v776_v17 = vpack.c.bf16 %v775_v15, %v774_v16 }
 0x50d   :  { %980 = vmatmul.mubr.msk.bf16.vlgmr.msra.gmra.mrb[20].mxu1 %vm60_vm1, %v776_v17 }
 0x5e0   :  { %v830_v20 = vpop.f32.mrb[20].mxu1 }
 0x5e1   :  { %v831_v21 = vadd.f32 %v830_v20, %v780_v19  ;;  %v981_v22 = vpop.f32.mrb[21].mxu1 }
 0x5e2   :  { %v833_v23 = vpop.f32.mrb[22].mxu1 }
 0x5e3   :  { %837 = vst.msk [vmem:[#allocation2] sm:$0xff] %vm60_vm1, %v831_v21  ;;  %v834_v24 = vadd.f32 %v833_v23, %v780_v19  ;;  %v982_v25 = vpop.f32.mrb[23].mxu1 }
 0x5e5   :  { %838 = vst.msk [vmem:[#allocation2 + $0x8] sm:$0xff] %vm60_vm1, %v834_v24 }
 0x5e6   :  { %1059 = shalt.err (!%p1056_p4)
}
 0x5e7   :  { %s1060_s7 = scalar_lea.hbm %s1298_s5, 256 }
 0x5e8   :  { %p1061_p5 = scmp.ne.s32.totalorder %s1298_s5, %s1060_s7  ;;  %p1064_p6 = scmp.lt.u32.totalorder %s1060_s7, %s1298_s5 }
 0x5ea   :  { %p1066_p7 = pnand %p1064_p6, %p1061_p5 }
 0x5ec   :  { %1069 = shalt.err (!%p1066_p7)
}
 0x5ed   :  { %s1081_s11 = smov 128  }
 0x5ee   :  { %850 = dma.vmem_to_hbm [thread:$0]  %s845_s29, 256, %s1298_s5, [#allocation3], %s1081_s11, %s1081_s11, %s1077_s24  }
 0x5ef   :  { %1070 = dma.done.wait [#allocation3], 256  }
 0x5f0   :  { %1071 = vsyncadd [#allocation3], 4294967040 }
 0x5f1   :  { %854 = vsyncpa [#allocation3], 1 }

</bundles_post_ra>
